<compile_context>
chip_gen: v7x
topology: tpu7x:2x2x1
jax: 0.10.0
libtpu: 0.0.40
codegen_flags: <defaults>
</compile_context>

<pallas_src>
import functools

import jax
import jax.numpy as jnp
from jax.experimental import pallas as pl
from jax.experimental.pallas import tpu as pltpu


def _round_up(x, m):
    return (x + m - 1) // m * m


def _app_embedding_kernel(x_ref, w_ref, b_ref, o_ref):
    """One (ts, E) tile of the (B, S, E) output.

    x_ref: (K, ts)  input slice in its native (B, K, S) layout / dtype
    w_ref: (E, K)   f32 Linear weight (PyTorch layout), grid-resident
    b_ref: (E, 1)   f32 Linear bias, grid-resident
    o_ref: (ts, E)  f32 output tile, natural (B, S, E) layout
    """
    # In-kernel cast (no-op for f32 callers; exact for {0,1} one-hot values in
    # narrower / integer dtypes).  Hidden under the input DMA.
    x = x_ref[...].astype(jnp.float32)
    # (E, ts) = W @ X_blk + b  -- MXU matmul with f32 accumulation.
    acc = jnp.dot(w_ref[...], x, preferred_element_type=jnp.float32) + b_ref[...]
    # In-kernel relayout (XLU) of the *small* (E, ts) result; the output is
    # written once, already in (seq, emb) order -- no wrapper transpose pass.
    o_ref[...] = jnp.transpose(acc).astype(o_ref.dtype)


@functools.partial(jax.jit, static_argnames=("seq_tile",))
def app_embedding_forward(one_hot_matrix, weight, bias, *, seq_tile=8192):
    """Mirror of AppEmbedding.forward.

    one_hot_matrix: (B, num_apps, S), any dtype ({0,1}-valued one-hot)
    weight:         (embedding_dim, num_apps) f32   (nn.Linear layout)
    bias:           (embedding_dim,) f32
    returns:        (B, S, embedding_dim) f32
    """
    B, K, S = one_hot_matrix.shape
    E = weight.shape[0]

    x = one_hot_matrix                     # native dtype: cast happens in-kernel
    w = weight.astype(jnp.float32)
    b2d = bias.astype(jnp.float32).reshape(E, 1)

    # ---- choose the sequence tile ------------------------------------------
    S_pad = S
    if S % 128 == 0:
        ts = min(S, seq_tile)              # lane-dense X tiles
    elif S <= 4096:
        ts = S                             # small / ragged S: one full-S tile
    else:
        # Large ragged S: pad to a multiple of 128 so tiles (and VMEM) stay
        # bounded instead of one huge full-S block.
        S_pad = _round_up(S, 128)
        x = jnp.pad(x, ((0, 0), (0, 0), (0, S_pad - S)))
        ts = min(S_pad, seq_tile)

    # v7x megacore: keep >= ~8 grid steps so both TensorCores get work.
    if ts % 128 == 0 and B * pl.cdiv(S_pad, ts) < 8:
        n_j = min(pl.cdiv(8, B), pl.cdiv(S_pad, 128))
        ts = min(ts, _round_up(pl.cdiv(S_pad, n_j), 128))

    grid = (B, pl.cdiv(S_pad, ts))

    out = pl.pallas_call(
        _app_embedding_kernel,
        out_shape=jax.ShapeDtypeStruct((B, S_pad, E), jnp.float32),
        grid_spec=pltpu.PrefetchScalarGridSpec(
            num_scalar_prefetch=0,
            grid=grid,
            in_specs=[
                # X: (1, K, ts) block of (B, K, S); batch dim squeezed away.
                pl.BlockSpec((None, K, ts), lambda bi, j: (bi, 0, j)),
                # W and bias: constant block index -> stay VMEM-resident.
                pl.BlockSpec((E, K), lambda bi, j: (0, 0)),
                pl.BlockSpec((E, 1), lambda bi, j: (0, 0)),
            ],
            # Output written once, directly in (B, S, E) layout.
            out_specs=pl.BlockSpec((None, ts, E), lambda bi, j: (bi, j, 0)),
        ),
        compiler_params=pltpu.CompilerParams(
            # Independent output tiles on both axes -> megacore-shardable.
            dimension_semantics=("parallel", "parallel"),
            # Explicit cap: > v5e's 16 MiB default scoped VMEM, < v7x physical.
            vmem_limit_bytes=32 * 1024 * 1024,
        ),
        cost_estimate=pl.CostEstimate(
            flops=2 * B * S_pad * K * E,
            transcendentals=0,
            bytes_accessed=(
                B * K * S_pad * x.dtype.itemsize   # X read (caller dtype)
                + E * K * 4 + E * 4                # W + bias (resident)
                + B * S_pad * E * 4                # output write (f32)
            ),
        ),
    )(x, w, b2d)

    if S_pad != S:
        out = out[:, :S, :]
    return out


if __name__ == "__main__":
    num_apps = 48
    embedding_dim = 16
    batch = 2
    seq = 8

    key = jax.random.PRNGKey(0)
    k_x, k_w, k_b = jax.random.split(key, 3)

    # Deterministic synthetic one-hot input in the module's native layout
    # (B, num_apps, S).
    idx = jax.random.randint(k_x, (batch, seq), 0, num_apps)
    one_hot = jax.nn.one_hot(idx, num_apps, dtype=jnp.float32)   # (B, S, K)
    one_hot_matrix = jnp.transpose(one_hot, (0, 2, 1))           # (B, K, S)

    # nn.Linear(num_apps, embedding_dim) parameters (PyTorch layout: (E, K)).
    bound = num_apps ** -0.5
    weight = jax.random.uniform(k_w, (embedding_dim, num_apps),
                                minval=-bound, maxval=bound, dtype=jnp.float32)
    bias = jax.random.uniform(k_b, (embedding_dim,),
                              minval=-bound, maxval=bound, dtype=jnp.float32)

    out = app_embedding_forward(one_hot_matrix, weight, bias)
    out = jax.block_until_ready(out)

    # Pure-JAX reference of the PyTorch forward.
    x_flat = jnp.transpose(one_hot_matrix.astype(jnp.float32),
                           (0, 2, 1)).reshape(-1, num_apps)
    ref = (x_flat @ weight.T + bias).reshape(batch, seq, embedding_dim)
    assert out.shape == (batch, seq, embedding_dim)
    assert jnp.allclose(out, ref, atol=1e-5), "mismatch vs reference"

    print("KERNEL_OK")
</pallas_src>

<mosaic_0001>
module attributes {stable_mosaic.version = 11 : i64} {
  func.func @_app_embedding_kernel(%arg0: i32, %arg1: i32, %arg2: memref<1x48x8xf32, #tpu.memory_space<vmem>>, %arg3: memref<16x48xf32, #tpu.memory_space<vmem>>, %arg4: memref<16x1xf32, #tpu.memory_space<vmem>>, %arg5: memref<1x8x16xf32, #tpu.memory_space<vmem>>) attributes {dimension_semantics = [#tpu.dimension_semantics<parallel>, #tpu.dimension_semantics<parallel>], iteration_bounds = array<i64: 2, 1>, scalar_prefetch = 0 : i64, scratch_operands = 0 : i64, tpu.core_type = #tpu.core_type<tc>, window_params = [{transform_indices = @transform_0, window_bounds = array<i64: 1, 48, 8>}, {pipeline_mode = #tpu.pipeline_mode<synchronous>, transform_indices = @transform_1, window_bounds = array<i64: 16, 48>}, {pipeline_mode = #tpu.pipeline_mode<synchronous>, transform_indices = @transform_2, window_bounds = array<i64: 16, 1>}, {transform_indices = @transform_3, window_bounds = array<i64: 1, 8, 16>}]} {
    %c0 = arith.constant 0 : index
    %c0_0 = arith.constant 0 : index
    %c0_1 = arith.constant 0 : index
    %0 = vector.load %arg2[%c0, %c0_0, %c0_1] : memref<1x48x8xf32, #tpu.memory_space<vmem>>, vector<1x48x8xf32>
    %1 = vector.shape_cast %0 : vector<1x48x8xf32> to vector<48x8xf32>
    %c0_2 = arith.constant 0 : index
    %c0_3 = arith.constant 0 : index
    %2 = vector.load %arg3[%c0_2, %c0_3] : memref<16x48xf32, #tpu.memory_space<vmem>>, vector<16x48xf32>
    %cst = arith.constant dense<0.000000e+00> : vector<16x8xf32>
    %3 = tpu.matmul %2, %1, %cst {dimension_numbers = #tpu.dot_dimension_numbers<[1], [0], [0], [1], [0, 0, 1, 1], [], []>} : vector<16x48xf32>, vector<48x8xf32>, vector<16x8xf32> -> vector<16x8xf32>
    %c0_4 = arith.constant 0 : index
    %c0_5 = arith.constant 0 : index
    %4 = vector.load %arg4[%c0_4, %c0_5] : memref<16x1xf32, #tpu.memory_space<vmem>>, vector<16x1xf32>
    %5 = vector.broadcast %4 : vector<16x1xf32> to vector<16x8xf32>
    %6 = arith.addf %3, %5 : vector<16x8xf32>
    %7 = tpu.transpose %6, [1, 0] : vector<16x8xf32> -> vector<8x16xf32>
    %c0_6 = arith.constant 0 : index
    %c0_7 = arith.constant 0 : index
    %c0_8 = arith.constant 0 : index
    %8 = vector.load %arg5[%c0_6, %c0_7, %c0_8] : memref<1x8x16xf32, #tpu.memory_space<vmem>>, vector<1x8x16xf32>
    %9 = vector.shape_cast %8 : vector<1x8x16xf32> to vector<8x16xf32>
    %10 = vector.shape_cast %7 : vector<8x16xf32> to vector<1x8x16xf32>
    tpu.vector_store %arg5[%c0_6, %c0_7, %c0_8], %10 {strides = array<i32>} : memref<1x8x16xf32, #tpu.memory_space<vmem>>, vector<1x8x16xf32>,
    return
  }
  func.func @transform_0(%arg0: i32, %arg1: i32) -> (i32, i32, i32) {
    %c0_i32 = arith.constant 0 : i32
    %c0_i32_0 = arith.constant 0 : i32
    return %arg0, %c0_i32, %arg1 : i32, i32, i32
  }
  func.func @transform_1(%arg0: i32, %arg1: i32) -> (i32, i32) {
    %c0_i32 = arith.constant 0 : i32
    %c0_i32_0 = arith.constant 0 : i32
    %c0_i32_1 = arith.constant 0 : i32
    return %c0_i32, %c0_i32_0 : i32, i32
  }
  func.func @transform_2(%arg0: i32, %arg1: i32) -> (i32, i32) {
    %c0_i32 = arith.constant 0 : i32
    %c0_i32_0 = arith.constant 0 : i32
    %c0_i32_1 = arith.constant 0 : i32
    return %c0_i32, %c0_i32_0 : i32, i32
  }
  func.func @transform_3(%arg0: i32, %arg1: i32) -> (i32, i32, i32) {
    %c0_i32 = arith.constant 0 : i32
    %c0_i32_0 = arith.constant 0 : i32
    return %arg0, %arg1, %c0_i32 : i32, i32, i32
  }
}

</mosaic_0001>

<bundles_post_ra>
// kernel: app_embedding_forward.1
= control target key start
LH: loop header
LB: loop body
LE: loop exit
PB: predicated region body
PF: predicated region fallthrough
CT: control target
= control target key end

     0   :  { %8 = vsyncpa [#allocation3], 0  ;;  %s754_s0 = inlined_call_operand.vmem [shape: f32[2,48,8], index: 0, kind: input, shape index: {}]   ;;  %s755_s1 = inlined_call_operand.vmem [shape: f32[16,48], index: 1, kind: input, shape index: {}]   ;;  %s756_s2 = inlined_call_operand.vmem [shape: f32[16,1], index: 2, kind: input, shape index: {}]   ;;  %s757_s3 = inlined_call_operand.hbm [shape: f32[2,8,16], index: 3, kind: output, shape index: {}]  }
   0x1   :  { %10 = vsyncpa [#allocation3 + $0x1], 0  ;;  %s628_s12 = smov 0   ;;  %s630_s13 = smov 0  }
   0x2   :  { %s632_s14 = smov 0   ;;  %s634_s15 = smov 0  }
   0x3   :  { %s636_s16 = smov 0   ;;  %s638_s17 = smov 0  }
   0x4 LB: > { %s419_s18 = sadd.s32 4294967295, %s604_s17   ;;  %s420_s19 = sadd.s32 4294967294, %s604_s17   ;;  %s604_s17 = sphi %s638_s17, %s16_s17   ;;  %s600_s16 = sphi %s636_s16, %s764_s16   ;;  %s596_s15 = sphi %s634_s15, %s763_s15   ;;  %s592_s14 = sphi %s632_s14, %s762_s14   ;;  %s588_s13 = sphi %s630_s13, %s761_s13   ;;  %s584_s12 = sphi %s628_s12, %s760_s12  }
   0x5   : > { %s28_s20 = sadd.s32 1, %s600_s16  ;;  %s107_s21 = sadd.s32 1, %s592_s14 }
   0x6   : > { %p30_p0 = scmp.ge.s32.totalorder %s28_s20, 2  ;;  %p117_p1 = scmp.ne.s32.totalorder %s592_s14, %s588_s13 }
   0x7   : > { %p118_p2 = scmp.eq.s32.totalorder %s419_s18, 1  ;;  %p123_p3 = scmp.ne.s32.totalorder %s588_s13, %s584_s12 }
   0x8   : > { %s766_s20 = smov (%p30_p0, %s28_s20), 0  ;;  %p124_p5 = scmp.eq.s32.totalorder %s420_s19, 1 }
   0x9   : > { %p668_p4 = por %p118_p2, %p117_p1  ;;  %s102_s23 = ssub.s32 %s600_s16, %s766_s20 }
   0xa   : > { %p423_p6 = scmp.ge.s32.totalorder %s604_s17, 1  ;;  %p105_p7 = scmp.eq.s32.totalorder %s102_s23, 0 }
   0xb   : > { %p675_p8 = por %p124_p5, %p123_p3  ;;  %p159_p9 = scmp.lt.s32.totalorder %s604_s17, 3 }
   0xc   : > { %s681_s25 = scalar_select %p105_p7, %s592_s14, %s107_s21  }
   0xd   : > { %p160_p10 = pnand %p423_p6, %p159_p9 }
   0xe   : > { %p186_p11 = scmp.lt.s32.totalorder (!%p160_p10), %s596_s15, 1  ;;  %v200_v0 = vld [vmem:[%s755_s1] sm:$0xff] (!%p160_p10)  ;;  %vm214_vm0 = vcmask (!%p160_p10), 392192   ;;  %v606_v2 = vmov (!%p160_p10), 0   ;;  %v203_v3 = vld [vmem:[%s756_s2 + $0x8] sm:$0xff] (!%p160_p10)  ;;  %s183_s18 = sand.u32 (!%p160_p10), 1, %s588_s13  }
   0xf   : > { %163 = sbr.rel (%p160_p10) target bundleno = 400 (0x190), region = 32  ;;  %v202_v1 = vld [vmem:[%s756_s2] sm:$0xff] (!%p160_p10)  ;;  %452 = vmatprep.mubr.msk.f32.mxu0 (!%p160_p10), %vm214_vm0, %v200_v0  ;;  %525 = vset.pattern.permute.xlu0 (!%p160_p10), %v606_v2  ;;  %v201_v13 = vld [vmem:[%s755_s1 + $0x8] sm:$0xff] (!%p160_p10)  ;;  %s424_s19 = sshll.u32 (!%p160_p10), %s183_s18, 3  ;;  %vm328_vm1 = vcmask (!%p160_p10), 130048  }
  0x10   : > { %206 = vperm.xlu0 (!%p160_p10), %525, %v202_v1   ;;  %s429_s21 = sshll.u32 (!%p160_p10), %s596_s15, 7  ;;  %s185_s23 = scalar_lea.vmem (!%p160_p10), [#allocation2], %s424_s19 }
  0x11   : > { %s345_s26 = sshll.u32 (!%p160_p10), %s185_s23, 4  ;;  %s707_s29 = scalar_lea.hbm (!%p160_p10), %s757_s3, %s429_s21  ;;  %s709_s26 = int_to_ptr.vmem [resolvable:$true] %s345_s26 }
  0x12   : > { %s526_s4 = scalar_lea.vmem (!%p160_p10), %s709_s26, 128 }
  0x13   : > { %p527_p12 = scmp.ne.s32.totalorder (!%p160_p10), %s709_s26, %s526_s4 }
  0x14   : > { %211 = vperm.xlu0 (!%p160_p10), %525, %v203_v3  }
  0x15   : > { %p528_p13 = pnand (!%p160_p10), %p527_p12, %p668_p4 }
  0x16   : > { %s187_s30 = scalar_select %p186_p11, %s596_s15, 1 }
  0x17   : > { %p529_p0 = pneg %p528_p13  ;;  %s607_s15 = smov [#allocation2]  }
  0x18   : > { %s467_s6 = smul.u32 48, %s187_s30  ;;  %s331_s30 = scalar_lea.sflag [#allocation3], %s183_s18 }
  0x19   : > { %s530_s5 = sshll.u32 %s607_s15, 4  ;;  %s531_s5 = int_to_ptr.vmem [resolvable:$false] %s530_s5 }
  0x1a   : > { %s193_s9 = scalar_lea.vmem %s754_s0, %s467_s6  ;;  %s532_s6 = scalar_lea.vmem %s531_s5, 256 }
  0x1b   : > { %v194_v4 = vld [vmem:[%s193_s9] sm:$0xff]  ;;  %v195_v5 = vld [vmem:[%s193_s9 + $0x8] sm:$0xff]  ;;  %v196_v6 = vld [vmem:[%s193_s9 + $0x10] sm:$0xff]  ;;  %p533_p1 = scmp.lt.s32.totalorder %s709_s26, %s531_s5  ;;  %p534_p2 = scmp.lt.s32.totalorder %s532_s6, %s526_s4 }
  0x1c   : > { %v455_v7 = vpack.c.bf16 %v195_v5, %v194_v4  ;;  %v197_v8 = vld [vmem:[%s193_s9 + $0x18] sm:$0xff]  ;;  %v198_v10 = vld [vmem:[%s193_s9 + $0x20] sm:$0xff]  ;;  %v199_v11 = vld [vmem:[%s193_s9 + $0x28] sm:$0xff] }
  0x1d   : > { %v459_v9 = vpack.c.bf16 %v197_v8, %v196_v6  ;;  %v463_v12 = vpack.c.bf16 %v199_v11, %v198_v10  ;;  %p535_p3 = por %p534_p2, %p533_p1 }
  0x1e   : > { %456 = vmatprep.subr.bf16.mxu0 %v455_v7 }
  0x1f   : > { %458 = vmatpush3.bf16.msra.mxu0 %v455_v7  ;;  %p536_p5 = pnand %p535_p3, %p529_p0 }
  0x20   : > { %460 = vmatprep.subr.bf16.mxu0 %v459_v9 }
  0x23   : > { %462 = vmatpush3.bf16.msra.mxu0 %v459_v9 }
  0x24   : > { %464 = vmatprep.subr.bf16.mxu0 %v463_v12 }
  0x27   : > { %466 = vmatpush3.bf16.msra.mxu0 %v463_v12 }
  0x2a   : > { %453 = vmatmul.mubr.msk.f32.vlgmr.msra.gmra.mrb[0].mxu0 %vm214_vm0, %v201_v13 }
  0x8f   : > { %v207_v14 = vpop.permute.xlu0 %206 }
  0x93   : > { %v212_v18 = vpop.permute.xlu0 %211 }
  0xfd   : > { %v454_v15 = vpop.f32.mrb[0].mxu0 }
  0xfe   : > { %v287_v16 = vpop.f32.mrb[1].mxu0  ;;  %v293_v19 = vadd.f32 %v454_v15, %v212_v18 }
  0xff   : > { %v288_v17 = vadd.f32 %v287_v16, %v207_v14 }
 0x101   : > { %296 = vxpose.xlu1.b32.start [1/2] (short) (narrow) %v288_v17, 8 }
 0x105   : > { %297 = vxpose.xlu1.b32.end [2/2] (short) (narrow) %v293_v19, 8 }
 0x181   : > { %v312_v20 = vpop.trf.xlu1 }
 0x182   : > { %329 = vst.msk [vmem:[%s185_s23] sm:$0xff] %vm328_vm1, %v312_v20 }
 0x183   : > { %539 = shalt.err (!%p536_p5)
}
 0x184   : > { %s540_s7 = scalar_lea.hbm %s707_s29, 128  ;;  %s544_s10 = scalar_lea.hbm %s757_s3, 256 }
 0x185   : > { %p541_p6 = scmp.ne.s32.totalorder %s707_s29, %s540_s7  ;;  %p545_p10 = scmp.lt.u32.totalorder %s707_s29, %s757_s3 }
 0x186   : > { %p546_p11 = scmp.lt.u32.totalorder %s544_s10, %s540_s7  ;;  %p548_p13 = scmp.lt.u32.totalorder %s540_s7, %s707_s29 }
 0x187   : > { %p542_p7 = pnand %p541_p6, %p668_p4 }
 0x188   : > { %p547_p12 = por %p546_p11, %p545_p10 }
 0x189   : > { %p543_p9 = pneg %p542_p7 }
 0x18a   : > { %p549_p0 = por %p548_p13, %p547_p12 }
 0x18c   : > { %p550_p1 = pnand %p549_p0, %p543_p9 }
 0x18e   : > { %553 = shalt.err (!%p550_p1)
}
 0x18f   : > { %468 = dma.vmem_to_hbm [thread:$0]  (%p668_p4), %s709_s26, 128, %s707_s29, %s331_s30  }
 0x190 PF: > { %p474_p2 = scmp.ge.s32.totalorder %s604_s17, 2  ;;  %s357_s19 = sand.u32 1, %s584_s12  }
 0x191   : > { %s358_s21 = scalar_lea.sflag [#allocation3], %s357_s19 }
 0x192   : > { %p471_p3 = pnand %p474_p2, %p675_p8 }
 0x194   : > { %579 = dma.done.wait (!%p471_p3), %s358_s21, 128  }
 0x195   : > { %581 = vsyncadd (!%p471_p3), %s358_s21, 4294967168  ;;  %s16_s17 = sadd.s32 1, %s604_s17   ;;  %s760_s12 = smov %s588_s13 }
 0x196   : > { %p13_p5 = scmp.ge.s32.totalorder %s16_s17, 4   ;;  %s761_s13 = smov %s592_s14 }
 0x197   : > { %s762_s14 = smov %s681_s25  ;;  %s763_s15 = smov %s600_s16 }
 0x198   : > { %s764_s16 = smov %s766_s20  ;;  %15 = sbr.rel (!%p13_p5) target bundleno = 4 (0x4), region = 67 }
 0x19f   :  { %363 = vsyncpa [#allocation3], 1 }
 0x1a0   :  { %365 = vsyncpa [#allocation3 + $0x1], 1 }

</bundles_post_ra>
